<compile_context>
chip_gen: v6e
topology: v6e:2x2x1
jax: 0.10.0
libtpu: 0.0.40
codegen_flags: <defaults>
</compile_context>

<pallas_src>
import functools

import jax
import jax.numpy as jnp
from jax.experimental import pallas as pl
from jax.experimental.pallas import tpu as pltpu


def _h2gcn_kernel(a1_ref, a2_ref, x_ref, o_ref, acc1_ref, acc2_ref, *,
                  feat, tk, x_resident, compute_dtype):
    # Grid: (row_tile i, k_tile k); k (axis 1) is the reduction axis.
    k = pl.program_id(1)

    @pl.when(k == 0)
    def _():
        acc1_ref[...] = jnp.zeros_like(acc1_ref)
        acc2_ref[...] = jnp.zeros_like(acc2_ref)

    if x_resident:
        # x_ref holds the whole [N, F] matrix (fetched from HBM once for the
        # entire kernel); slice out this step's k-chunk.
        start = pl.multiple_of(k * tk, tk)
        x_tile = x_ref[pl.ds(start, tk), :]
    else:
        x_tile = x_ref[...]

    # Per-tile cast on the VPU (no-op if inputs already match compute_dtype);
    # this replaces the old wrapper-side cast that cost an extra HBM pass.
    x_tile = x_tile.astype(compute_dtype)
    a1 = a1_ref[...].astype(compute_dtype)
    a2 = a2_ref[...].astype(compute_dtype)

    # One shared RHS tile feeds both MXU matmuls; accumulate in f32.
    acc1_ref[...] += jnp.dot(a1, x_tile, preferred_element_type=jnp.float32)
    acc2_ref[...] += jnp.dot(a2, x_tile, preferred_element_type=jnp.float32)

    @pl.when(k == pl.num_programs(1) - 1)
    def _():
        # Fused cat: columns [0, F) = adj_t @ x, [F, 2F) = adj_t2 @ x.
        o_ref[:, :feat] = acc1_ref[...].astype(o_ref.dtype)
        o_ref[:, feat:] = acc2_ref[...].astype(o_ref.dtype)


def _usable_vmem_bytes():
    """Generation-aware VMEM budget with headroom for compiler scratch."""
    try:
        cap = pltpu.get_tpu_info().vmem_capacity_bytes
    except Exception:
        cap = 64 * 1024 * 1024  # conservative (v7x-sized) fallback
    # ~56 MiB on v7x (64 MiB physical), ~112 MiB on v5e/v6e (128 MiB physical).
    return int(cap * 7 // 8)


def h2gcn_conv(x, adj_t, adj_t2, *, tm=None, tk=None,
               compute_dtype=jnp.bfloat16, out_dtype=None):
    """x: [N, F]; adj_t, adj_t2: [N, N]  ->  [N, 2F] (== torch.cat([A@x, A2@x], 1)).

    Inputs are consumed in their stored dtype (no wrapper-side cast pass);
    tiles are cast to `compute_dtype` inside the kernel.  For repeated calls
    on the same graph, store adj_t/adj_t2 in bf16 at rest to halve the
    dominant HBM stream.
    """
    N, F = x.shape
    assert adj_t.shape == (N, N) and adj_t2.shape == (N, N)

    out_dtype = x.dtype if out_dtype is None else out_dtype
    a_bytes = jnp.dtype(adj_t.dtype).itemsize
    x_bytes = jnp.dtype(x.dtype).itemsize
    o_bytes = jnp.dtype(out_dtype).itemsize

    usable_vmem = _usable_vmem_bytes()

    # --- tile sizing -------------------------------------------------------
    if tm is None:
        tm = 512
    if tk is None:
        # Long contiguous k rows amortize per-step overhead; at large F keep
        # tk=2048 where VMEM is plentiful (v5e/v6e), drop to 1024 on v7x.
        tk = 2048 if (F <= 256 or usable_vmem > (64 << 20)) else 1024
    tm = min(tm, N)
    tk = min(tk, N)

    # v7x has 2 TensorCores sharing HBM: aim for >= 4 row tiles so the
    # "parallel" i axis shards evenly (floor 128 rows for MXU efficiency;
    # harmless on single-TC v5e/v6e).
    row_floor = 128 if N >= 256 else 8
    while (N // tm < 4 and tm // 2 >= row_floor
           and (tm // 2) % 8 == 0 and N % (tm // 2) == 0):
        tm //= 2
    if N // tm < 2 and N >= 16 and (N // 2) % 8 == 0:
        tm = N // 2

    # Hold x fully resident in VMEM when small: with a constant index_map it
    # is DMA'd from HBM exactly once instead of once per row tile.  (The
    # default double buffer is counted at 2x in the VMEM estimate below.)
    x_resident = 2 * N * F * x_bytes <= min(16 << 20, usable_vmem // 4)

    def _vmem_est(tm_, tk_):
        adj = 2 * 2 * tm_ * tk_ * a_bytes            # 2 adjacencies, 2 buffers each
        xb = (2 * N * F * x_bytes) if x_resident else (2 * tk_ * F * x_bytes)
        out = 2 * tm_ * 2 * F * o_bytes              # output block, 2 buffers
        acc = 2 * tm_ * F * 4                        # two f32 accumulators
        return adj + xb + out + acc

    # Auto-shrink to the generation's VMEM budget (k first, then rows).
    while (_vmem_est(tm, tk) > usable_vmem and tk > 512
           and (tk // 2) % 128 == 0 and N % (tk // 2) == 0):
        tk //= 2
    while (_vmem_est(tm, tk) > usable_vmem and tm > 128
           and (tm // 2) % 8 == 0 and N % (tm // 2) == 0):
        tm //= 2
    est = _vmem_est(tm, tk)
    assert est <= usable_vmem, "tile config exceeds this chip's VMEM; shrink tm/tk"
    vmem_limit = min(max(int(est * 1.5), 32 * 1024 * 1024), usable_vmem)

    # TODO(synk): pad N / F (or add masked tails) for non-tile-friendly shapes.
    assert N % tm == 0 and N % tk == 0
    assert tm % 8 == 0 and (tk % 128 == 0 or tk == N) and F % 128 == 0

    if x_resident:
        x_spec = pl.BlockSpec((N, F), lambda i, k: (0, 0))
    else:
        x_spec = pl.BlockSpec((tk, F), lambda i, k: (k, 0))

    grid = (N // tm, N // tk)
    kernel = functools.partial(_h2gcn_kernel, feat=F, tk=tk,
                               x_resident=x_resident,
                               compute_dtype=compute_dtype)

    return pl.pallas_call(
        kernel,
        out_shape=jax.ShapeDtypeStruct((N, 2 * F), out_dtype),
        grid_spec=pltpu.PrefetchScalarGridSpec(
            num_scalar_prefetch=0,
            grid=grid,
            in_specs=[
                pl.BlockSpec((tm, tk), lambda i, k: (i, k)),   # adj_t
                pl.BlockSpec((tm, tk), lambda i, k: (i, k)),   # adj_t2
                x_spec,                                        # x
            ],
            out_specs=pl.BlockSpec((tm, 2 * F), lambda i, k: (i, 0)),
            scratch_shapes=[
                pltpu.VMEM((tm, F), jnp.float32),
                pltpu.VMEM((tm, F), jnp.float32),
            ],
        ),
        compiler_params=pltpu.CompilerParams(
            dimension_semantics=("parallel", "arbitrary"),
            vmem_limit_bytes=vmem_limit,
        ),
    )(adj_t, adj_t2, x)


if __name__ == "__main__":
    key = jax.random.PRNGKey(0)
    k1, k2, k3 = jax.random.split(key, 3)

    # Small graph: N nodes, F features (tile-friendly sizes).
    N, F = 256, 128
    x = jax.random.normal(k1, (N, F), dtype=jnp.float32)
    adj_t = jax.random.normal(k2, (N, N), dtype=jnp.float32) / N
    adj_t2 = jax.random.normal(k3, (N, N), dtype=jnp.float32) / N

    out = jax.block_until_ready(h2gcn_conv(x, adj_t, adj_t2))
    assert out.shape == (N, 2 * F), out.shape

    # Reference at the kernel's compute precision (bf16 mul, f32 accumulate).
    a1b = adj_t.astype(jnp.bfloat16)
    a2b = adj_t2.astype(jnp.bfloat16)
    xb = x.astype(jnp.bfloat16)
    ref_bf = jnp.concatenate(
        [jnp.dot(a1b, xb, preferred_element_type=jnp.float32),
         jnp.dot(a2b, xb, preferred_element_type=jnp.float32)], axis=1)
    assert jnp.allclose(out, ref_bf, atol=2e-3, rtol=2e-3)

    # Loose sanity check against the full-f32 torch.cat reference.
    # (bf16-compute is an intentional precision choice for normalized
    #  adjacencies; pass compute_dtype=jnp.float32 for a closer match.)
    ref_f32 = jnp.concatenate([adj_t @ x, adj_t2 @ x], axis=1)
    assert jnp.allclose(out, ref_f32, atol=2e-2, rtol=2e-2)

    print("KERNEL_OK")
</pallas_src>

<mosaic_0001>
module attributes {stable_mosaic.version = 11 : i64} {
  func.func @_h2gcn_kernel(%arg0: i32, %arg1: i32, %arg2: memref<128x256xf32, #tpu.memory_space<vmem>>, %arg3: memref<128x256xf32, #tpu.memory_space<vmem>>, %arg4: memref<256x128xf32, #tpu.memory_space<vmem>>, %arg5: memref<128x256xf32, #tpu.memory_space<vmem>>, %arg6: memref<128x128xf32, #tpu.memory_space<vmem>>, %arg7: memref<128x128xf32, #tpu.memory_space<vmem>>) attributes {dimension_semantics = [#tpu.dimension_semantics<parallel>, #tpu.dimension_semantics<arbitrary>], iteration_bounds = array<i64: 2, 1>, scalar_prefetch = 0 : i64, scratch_operands = 2 : i64, tpu.core_type = #tpu.core_type<tc>, window_params = [{transform_indices = @transform_0, window_bounds = array<i64: 128, 256>}, {transform_indices = @transform_1, window_bounds = array<i64: 128, 256>}, {pipeline_mode = #tpu.pipeline_mode<synchronous>, transform_indices = @transform_2, window_bounds = array<i64: 256, 128>}, {transform_indices = @transform_3, window_bounds = array<i64: 128, 256>}]} {
    %c0_i32 = arith.constant 0 : i32
    %0 = arith.cmpi eq, %arg1, %c0_i32 : i32
    %1 = arith.extui %0 : i1 to i32
    %c0_i32_0 = arith.constant 0 : i32
    %2 = arith.cmpi ne, %1, %c0_i32_0 : i32
    scf.if %2 {
      %cst_16 = arith.constant 0.000000e+00 : f32
      %23 = vector.broadcast %cst_16 : f32 to vector<128x128xf32>
      %c0_17 = arith.constant 0 : index
      %c0_18 = arith.constant 0 : index
      %24 = vector.load %arg6[%c0_17, %c0_18] : memref<128x128xf32, #tpu.memory_space<vmem>>, vector<128x128xf32>
      tpu.vector_store %arg6[%c0_17, %c0_18], %23 {strides = array<i32>} : memref<128x128xf32, #tpu.memory_space<vmem>>, vector<128x128xf32>,
      %cst_19 = arith.constant 0.000000e+00 : f32
      %25 = vector.broadcast %cst_19 : f32 to vector<128x128xf32>
      %c0_20 = arith.constant 0 : index
      %c0_21 = arith.constant 0 : index
      %26 = vector.load %arg7[%c0_20, %c0_21] : memref<128x128xf32, #tpu.memory_space<vmem>>, vector<128x128xf32>
      tpu.vector_store %arg7[%c0_20, %c0_21], %25 {strides = array<i32>} : memref<128x128xf32, #tpu.memory_space<vmem>>, vector<128x128xf32>,
    } else {
    }
    %c256_i32 = arith.constant 256 : i32
    %3 = arith.muli %arg1, %c256_i32 : i32
    %4 = tpu.assume_multiple %3, 256 : i32
    %5 = arith.index_cast %4 : i32 to index
    %c0 = arith.constant 0 : index
    %6 = vector.load %arg4[%5, %c0] : memref<256x128xf32, #tpu.memory_space<vmem>>, vector<256x128xf32>
    %7 = arith.truncf %6 : vector<256x128xf32> to vector<256x128xbf16>
    %c0_1 = arith.constant 0 : index
    %c0_2 = arith.constant 0 : index
    %8 = vector.load %arg2[%c0_1, %c0_2] : memref<128x256xf32, #tpu.memory_space<vmem>>, vector<128x256xf32>
    %9 = arith.truncf %8 : vector<128x256xf32> to vector<128x256xbf16>
    %c0_3 = arith.constant 0 : index
    %c0_4 = arith.constant 0 : index
    %10 = vector.load %arg3[%c0_3, %c0_4] : memref<128x256xf32, #tpu.memory_space<vmem>>, vector<128x256xf32>
    %11 = arith.truncf %10 : vector<128x256xf32> to vector<128x256xbf16>
    %c0_5 = arith.constant 0 : index
    %c0_6 = arith.constant 0 : index
    %12 = vector.load %arg6[%c0_5, %c0_6] : memref<128x128xf32, #tpu.memory_space<vmem>>, vector<128x128xf32>
    %cst = arith.constant dense<0.000000e+00> : vector<128x128xf32>
    %13 = tpu.matmul %9, %7, %cst {dimension_numbers = #tpu.dot_dimension_numbers<[1], [0], [0], [1], [0, 0, 1, 1], [], []>} : vector<128x256xbf16>, vector<256x128xbf16>, vector<128x128xf32> -> vector<128x128xf32>
    %14 = arith.addf %12, %13 : vector<128x128xf32>
    %c0_7 = arith.constant 0 : index
    %c0_8 = arith.constant 0 : index
    %15 = vector.load %arg6[%c0_7, %c0_8] : memref<128x128xf32, #tpu.memory_space<vmem>>, vector<128x128xf32>
    tpu.vector_store %arg6[%c0_7, %c0_8], %14 {strides = array<i32>} : memref<128x128xf32, #tpu.memory_space<vmem>>, vector<128x128xf32>,
    %c0_9 = arith.constant 0 : index
    %c0_10 = arith.constant 0 : index
    %16 = vector.load %arg7[%c0_9, %c0_10] : memref<128x128xf32, #tpu.memory_space<vmem>>, vector<128x128xf32>
    %cst_11 = arith.constant dense<0.000000e+00> : vector<128x128xf32>
    %17 = tpu.matmul %11, %7, %cst_11 {dimension_numbers = #tpu.dot_dimension_numbers<[1], [0], [0], [1], [0, 0, 1, 1], [], []>} : vector<128x256xbf16>, vector<256x128xbf16>, vector<128x128xf32> -> vector<128x128xf32>
    %18 = arith.addf %16, %17 : vector<128x128xf32>
    %c0_12 = arith.constant 0 : index
    %c0_13 = arith.constant 0 : index
    %19 = vector.load %arg7[%c0_12, %c0_13] : memref<128x128xf32, #tpu.memory_space<vmem>>, vector<128x128xf32>
    tpu.vector_store %arg7[%c0_12, %c0_13], %18 {strides = array<i32>} : memref<128x128xf32, #tpu.memory_space<vmem>>, vector<128x128xf32>,
    %c0_i32_14 = arith.constant 0 : i32
    %20 = arith.cmpi eq, %arg1, %c0_i32_14 : i32
    %21 = arith.extui %20 : i1 to i32
    %c0_i32_15 = arith.constant 0 : i32
    %22 = arith.cmpi ne, %21, %c0_i32_15 : i32
    scf.if %22 {
      %c0_16 = arith.constant 0 : index
      %c0_17 = arith.constant 0 : index
      %23 = vector.load %arg6[%c0_16, %c0_17] : memref<128x128xf32, #tpu.memory_space<vmem>>, vector<128x128xf32>
      %c0_18 = arith.constant 0 : index
      %c0_19 = arith.constant 0 : index
      %24 = vector.load %arg5[%c0_18, %c0_19] : memref<128x256xf32, #tpu.memory_space<vmem>>, vector<128x128xf32>
      tpu.vector_store %arg5[%c0_18, %c0_19], %23 {strides = array<i32>} : memref<128x256xf32, #tpu.memory_space<vmem>>, vector<128x128xf32>,
      %c0_20 = arith.constant 0 : index
      %c0_21 = arith.constant 0 : index
      %25 = vector.load %arg7[%c0_20, %c0_21] : memref<128x128xf32, #tpu.memory_space<vmem>>, vector<128x128xf32>
      %c0_22 = arith.constant 0 : index
      %c128 = arith.constant 128 : index
      %26 = vector.load %arg5[%c0_22, %c128] : memref<128x256xf32, #tpu.memory_space<vmem>>, vector<128x128xf32>
      tpu.vector_store %arg5[%c0_22, %c128], %25 {strides = array<i32>} : memref<128x256xf32, #tpu.memory_space<vmem>>, vector<128x128xf32>,
    } else {
    }
    return
  }
  func.func @transform_0(%arg0: i32, %arg1: i32) -> (i32, i32) {
    %c0_i32 = arith.constant 0 : i32
    return %arg0, %arg1 : i32, i32
  }
  func.func @transform_1(%arg0: i32, %arg1: i32) -> (i32, i32) {
    %c0_i32 = arith.constant 0 : i32
    return %arg0, %arg1 : i32, i32
  }
  func.func @transform_2(%arg0: i32, %arg1: i32) -> (i32, i32) {
    %c0_i32 = arith.constant 0 : i32
    %c0_i32_0 = arith.constant 0 : i32
    %c0_i32_1 = arith.constant 0 : i32
    return %c0_i32, %c0_i32_0 : i32, i32
  }
  func.func @transform_3(%arg0: i32, %arg1: i32) -> (i32, i32) {
    %c0_i32 = arith.constant 0 : i32
    %c0_i32_0 = arith.constant 0 : i32
    return %arg0, %c0_i32 : i32, i32
  }
}

</mosaic_0001>

<bundles_post_ra>
// kernel: tpu_custom_call.1
= control target key start
LH: loop header
LB: loop body
LE: loop exit
PB: predicated region body
PF: predicated region fallthrough
CT: control target
= control target key end

     0   :  { %s1696_s0 = inlined_call_operand.hbm [shape: f32[256,256], index: 0, kind: input, shape index: {}]   ;;  %s1697_s1 = inlined_call_operand.hbm [shape: f32[256,256], index: 1, kind: input, shape index: {}]   ;;  %s1698_s2 = inlined_call_operand.hbm [shape: f32[256,128], index: 2, kind: input, shape index: {}]   ;;  %s1699_s3 = inlined_call_operand.hbm [shape: f32[256,256], index: 3, kind: output, shape index: {}]  }
   0x1   :  { %1702 = sst [smem:[#allocation18_spill]] %s1696_s0 }
   0x2   :  { %1703 = sst [smem:[#allocation19_spill]] %s1698_s2 }
   0x3   :  { %8 = vsyncpa [#allocation5], 0 }
   0x4   :  { %10 = vsyncpa [#allocation5 + $0x1], 0 }
   0x5   :  { %11 = vsyncpa [#allocation8], 0 }
   0x6   :  { %13 = vsyncpa [#allocation8 + $0x1], 0 }
   0x7   :  { %14 = vsyncpa [#allocation6], 0 }
   0x8   :  { %16 = vsyncpa [#allocation6 + $0x1], 0  ;;  %s1390_s12 = smov 0   ;;  %s1392_s13 = smov 0  }
   0x9   :  { %s1394_s14 = smov 0   ;;  %s1396_s15 = smov 0  }
   0xa   :  { %s1398_s16 = smov 0   ;;  %s1400_s17 = smov 0  }
   0xb LB: > { %1704 = sst [smem:[#allocation15_spill]] %s1354_s16  ;;  %s1421_s18 = sadd.s32 4294967295, %s1358_s17   ;;  %s1358_s17 = sphi %s1400_s17, %s22_s17   ;;  %s1354_s16 = sphi %s1398_s16, %s1720_s16   ;;  %s1350_s15 = sphi %s1396_s15, %s1719_s15   ;;  %s1346_s14 = sphi %s1394_s14, %s1723_s14   ;;  %s1342_s13 = sphi %s1392_s13, %s1722_s13   ;;  %s1338_s12 = sphi %s1390_s12, %s1721_s12  }
   0xc   : > { %s947_s19 = sadd.s32 4294967294, %s1358_s17   ;;  %p56_p0 = scmp.ne.s32.totalorder %s1342_s13, %s1338_s12 }
   0xd   : > { %p57_p1 = scmp.eq.s32.totalorder %s1421_s18, 0  ;;  %p135_p3 = scmp.eq.s32.totalorder %s947_s19, 1 }
   0xe   : > { %p948_p5 = scmp.ge.s32.totalorder %s1358_s17, 1  ;;  %p142_p7 = scmp.lt.s32.totalorder %s1358_s17, 3 }
   0xf   : > { %p1430_p4 = por %p57_p1, %p56_p0  ;;  %p1435_p6 = por %p135_p3, %p56_p0 }
  0x10   : > { %p1440_p8 = pnand %p948_p5, %p142_p7  ;;  %s1360_s23 = smov [#allocation9]  }
  0x11   : > { %s1706_s21 = scalar_select %p1435_p6, 1, 0 }
  0x12   : > { %s154_s24 = sshll.u32 %s1360_s23, 4  ;;  %p1114_p9 = pneg %p1440_p8  ;;  %s155_s24 = int_to_ptr.vmem [resolvable:$true] %s154_s24 }
  0x13   : > { %p950_p10 = scmp.ge.s32.totalorder %s1358_s17, 2  ;;  %s34_s26 = sadd.s32 1, %s1354_s16 }
  0x14   : > { %p1449_p11 = pnand %p1114_p9, %p57_p1  ;;  %s1199_s27 = scalar_lea.vmem %s155_s24, 4096 }
  0x15   : > { %p1200_p13 = scmp.ne.s32.totalorder %s155_s24, %s1199_s27  ;;  %p1207_p5 = scmp.lt.s32.totalorder %s155_s24, %s155_s24 }
  0x16   : > { %p1190_p12 = pneg %p1449_p11  ;;  %p1208_p7 = scmp.lt.s32.totalorder %s1199_s27, %s1199_s27 }
  0x18   : > { %p1202_p0 = pnand %p1200_p13, %p1190_p12  ;;  %p1209_p2 = por %p1208_p7, %p1207_p5 }
  0x1a   : > { %p1203_p3 = pneg %p1202_p0 }
  0x1c   : > { %p1210_p6 = pnand %p1209_p2, %p1203_p3 }
  0x1e   : > { %1213 = shalt.err (!%p1210_p6)
}
  0x1f   : > { %s1361_s28 = smov 128   ;;  %s1362_s29 = smov 8  }
  0x20   : > { %s1709_s2 = sld [smem:[#allocation19_spill]]  ;;  %p36_p2 = scmp.ge.s32.totalorder %s34_s26, 2 }
  0x21   : > { %s43_s5 = sadd.s32 1, %s1346_s14  ;;  %p50_p6 = scmp.ne.s32.totalorder %s1346_s14, %s1342_s13 }
  0x22   : > { %p51_p9 = scmp.eq.s32.totalorder %s1358_s17, 0  ;;  %s1725_s26 = smov (%p36_p2, %s34_s26), 0 }
  0x23   : > { %1710 = sst [smem:[#allocation16_spill]] %s1725_s26  ;;  %p1712_p13 = scmp.eq.s32.totalorder %s1421_s18, 1 }
  0x24   : > { %p1467_p12 = por %p51_p9, %p50_p6  ;;  %s38_s8 = ssub.s32 %s1354_s16, %s1725_s26 }
  0x25   : > { %p1473_p0 = por %p1712_p13, %p50_p6  ;;  %p1130_p3 = scmp.lt.s32.totalorder %s1358_s17, 2 }
  0x26   : > { %1117 = dma.hbm_to_vmem [thread:$0]  (!%p1449_p11), %s1709_s2, 4096, %s155_s24, [#allocation8], %s1361_s28, %s1361_s28, %s1362_s29  }
  0x27   : > { %p41_p11 = scmp.eq.s32.totalorder %s38_s8, 0  ;;  %s168_s9 = sand.u32 1, %s1346_s14  }
  0x28   : > { %s1481_s10 = sshll.u32 %s168_s9, 8  ;;  %s971_s19 = sshll.u32 %s1354_s16, 12 }
  0x29   : > { %s1484_s11 = scalar_select %p41_p11, %s1346_s14, %s43_s5  }
  0x2a   : > { %s1715_s0 = sld [smem:[#allocation18_spill]]  ;;  %s172_s27 = scalar_lea.vmem [#allocation4], %s1481_s10 }
  0x2b   : > { %1714 = sst [smem:[#allocation17_spill]] %s1484_s11  ;;  %s182_s28 = sshll.u32 %s172_s27, 4  ;;  %s183_s28 = int_to_ptr.vmem [resolvable:$true] %s182_s28 }
  0x2c   : > { %p1493_p5 = pnand %p1130_p3, %p1467_p12  ;;  %s169_s30 = scalar_lea.sflag [#allocation5], %s168_s9 }
  0x2d   : > { %s1227_s4 = scalar_lea.vmem %s183_s28, 4096  ;;  %s1363_s5 = smov [#allocation4]  }
  0x2e   : > { %p1216_p7 = pneg %p1493_p5  ;;  %p1228_p2 = scmp.ne.s32.totalorder %s183_s28, %s1227_s4 }
  0x2f   : > { %s1232_s8 = sshll.u32 %s1363_s5, 4  ;;  %s1233_s8 = int_to_ptr.vmem [resolvable:$false] %s1232_s8 }
  0x30   : > { %s181_s25 = scalar_lea.hbm %s1715_s0, %s971_s19  ;;  %p1230_p6 = pnand %p1228_p2, %p1216_p7 }
  0x31   : > { %s1234_s23 = scalar_lea.vmem %s1233_s8, 8192  ;;  %p1235_p13 = scmp.lt.s32.totalorder %s183_s28, %s1233_s8 }
  0x32   : > { %p1231_p9 = pneg %p1230_p6  ;;  %p1236_p12 = scmp.lt.s32.totalorder %s1234_s23, %s1227_s4 }
  0x34   : > { %p1237_p3 = por %p1236_p12, %p1235_p13 }
  0x36   : > { %p1238_p11 = pnand %p1237_p3, %p1231_p9 }
  0x38   : > { %1241 = shalt.err (!%p1238_p11)
}
  0x39   : > { %s1364_s6 = smov 256   ;;  %s1365_s9 = smov 16  }
  0x3a   : > { %1121 = dma.hbm_to_vmem [thread:$0]  (!%p1493_p5), %s181_s25, 4096, %s183_s28, %s169_s30, %s1364_s6, %s1364_s6, %s1365_s9  }
  0x3b   : > { %s205_s0 = scalar_lea.hbm %s1697_s1, %s971_s19  ;;  %s196_s5 = scalar_lea.vmem [#allocation7], %s1481_s10 }
  0x3c   : > { %s206_s2 = sshll.u32 %s196_s5, 4  ;;  %s192_s8 = sand.u32 1, %s1358_s17   ;;  %s207_s2 = int_to_ptr.vmem [resolvable:$true] %s206_s2 }
  0x3d   : > { %s193_s4 = scalar_lea.sflag [#allocation8], %s192_s8  ;;  %s1255_s23 = scalar_lea.vmem %s207_s2, 4096 }
  0x3e   : > { %p1256_p2 = scmp.ne.s32.totalorder %s207_s2, %s1255_s23  ;;  %s1366_s26 = smov [#allocation7]  }
  0x3f   : > { %s1260_s16 = sshll.u32 %s1366_s26, 4  ;;  %s1261_s16 = int_to_ptr.vmem [resolvable:$false] %s1260_s16 }
  0x40   : > { %p1258_p6 = pnand %p1256_p2, %p1216_p7  ;;  %s1262_s11 = scalar_lea.vmem %s1261_s16, 8192 }
  0x41   : > { %p1263_p13 = scmp.lt.s32.totalorder %s207_s2, %s1261_s16  ;;  %p1264_p12 = scmp.lt.s32.totalorder %s1262_s11, %s1255_s23 }
  0x42   : > { %p1259_p9 = pneg %p1258_p6 }
  0x43   : > { %p1265_p3 = por %p1264_p12, %p1263_p13 }
  0x45   : > { %p1266_p11 = pnand %p1265_p3, %p1259_p9 }
  0x47   : > { %1269 = shalt.err (!%p1266_p11)
}
  0x48   : > { %1124 = dma.hbm_to_vmem [thread:$0]  (!%p1493_p5), %s205_s0, 4096, %s207_s2, %s193_s4, %s1364_s6, %s1364_s6, %s1365_s9  }
  0x49   : > { %218 = sbr.rel (%p1440_p8) target bundleno = 390 (0x186), region = 32  ;;  %s1517_s10 = sand.u32 (!%p1440_p8), 1, %s1342_s13  }
  0x4a   : > { %s1520_s26 = sshll.u32 (!%p1440_p8), %s1517_s10, 8  ;;  %s221_s16 = scalar_lea.sflag (!%p1440_p8), [#allocation5], %s1517_s10 }
  0x4b   : > { %s1524_s11 = scalar_lea.vmem (!%p1440_p8), [#allocation4], %s1520_s26 }
  0x4e   : > { %1321 = dma.done.wait (%p1430_p4), %s221_s16, 4096  }
  0x4f   : > { %1323 = vsyncadd (%p1430_p4), %s221_s16, 4294963200  ;;  %s229_s0 = sand.u32 1, %s1421_s18   ;;  %s1532_s22 = scalar_lea.vmem [#allocation7], %s1520_s26 }
  0x50   : > { %s230_s2 = scalar_lea.sflag [#allocation8], %s229_s0 }
  0x51   : > { %1325 = dma.done.wait (%p1430_p4), %s230_s2, 4096  }
  0x52   : > { %1327 = vsyncadd (%p1430_p4), %s230_s2, 4294963200 }
  0x53   : > { %1329 = dma.done.wait (%p57_p1), [#allocation8], 4096  }
  0x54   : > { %1331 = vsyncadd (%p57_p1), [#allocation8], 4294963200  ;;  %v339_v0 = vld [vmem:[#allocation9 + $0xf0] sm:$0xff]  ;;  %v340_v1 = vld [vmem:[#allocation9 + $0xf8] sm:$0xff]  ;;  %s1607_s18 = scalar_lea.vmem [#allocation10], %s1520_s26  ;;  %s975_s20 = sshll.u32 %s1350_s15, 12 }
  0x55   : > { %v323_v2 = vld [vmem:[#allocation9 + $0x70] sm:$0xff]  ;;  %v356_v3 = vpack.c.bf16 %v340_v1, %v339_v0  ;;  %v324_v4 = vld [vmem:[#allocation9 + $0x78] sm:$0xff]  ;;  %v337_v5 = vld [vmem:[#allocation9 + $0xe0] sm:$0xff]  ;;  %s825_s19 = sshll.u32 %s1607_s18, 4  ;;  %s1644_s29 = scalar_lea.hbm %s1699_s3, %s975_s20  ;;  %s1646_s19 = int_to_ptr.vmem [resolvable:$true] %s825_s19 }
  0x56   : > { %v338_v6 = vld [vmem:[#allocation9 + $0xe8] sm:$0xff]  ;;  %v348_v7 = vpack.c.bf16 %v324_v4, %v323_v2  ;;  %v321_v9 = vld [vmem:[#allocation9 + $0x60] sm:$0xff]  ;;  %v335_v11 = vld [vmem:[#allocation9 + $0xd0] sm:$0xff]  ;;  %s811_s15 = scalar_lea.sflag [#allocation6], %s1517_s10  ;;  %s1270_s30 = scalar_lea.vmem %s1646_s19, 4096 }
  0x57   : > { %v355_v8 = vpack.c.bf16 %v338_v6, %v337_v5  ;;  %v322_v10 = vld [vmem:[#allocation9 + $0x68] sm:$0xff]  ;;  %976 = vmatprep.subr.bf16.mxu0 %v356_v3  ;;  %1040 = vmatprep.subr.bf16.mxu1 %v356_v3  ;;  %v336_v12 = vld [vmem:[#allocation9 + $0xd8] sm:$0xff]  ;;  %v319_v15 = vld [vmem:[#allocation9 + $0x50] sm:$0xff]  ;;  %p1271_p1 = scmp.ne.s32.totalorder %s1646_s19, %s1270_s30  ;;  %s1367_s6 = smov [#allocation10]  }
  0x58   : > { %977 = vmatpush3.bf16.msra.mxu0 %v348_v7  ;;  %1041 = vmatpush3.bf16.msra.mxu1 %v348_v7  ;;  %v347_v13 = vpack.c.bf16 %v322_v10, %v321_v9  ;;  %v354_v14 = vpack.c.bf16 %v336_v12, %v335_v11  ;;  %v320_v16 = vld [vmem:[#allocation9 + $0x58] sm:$0xff]  ;;  %v333_v17 = vld [vmem:[#allocation9 + $0xc0] sm:$0xff]  ;;  %v334_v18 = vld [vmem:[#allocation9 + $0xc8] sm:$0xff]  ;;  %s1274_s9 = sshll.u32 %s1367_s6, 4  ;;  %s1275_s9 = int_to_ptr.vmem [resolvable:$false] %s1274_s9 }
  0x59   : > { %978 = vmatprep.subr.bf16.mxu0 %v355_v8  ;;  %1042 = vmatprep.subr.bf16.mxu1 %v355_v8  ;;  %v346_v19 = vpack.c.bf16 %v320_v16, %v319_v15  ;;  %v353_v20 = vpack.c.bf16 %v334_v18, %v333_v17  ;;  %v317_v21 = vld [vmem:[#allocation9 + $0x40] sm:$0xff]  ;;  %v318_v22 = vld [vmem:[#allocation9 + $0x48] sm:$0xff]  ;;  %v331_v23 = vld [vmem:[#allocation9 + $0xb0] sm:$0xff]  ;;  %p1272_p4 = pnand %p1271_p1, %p1473_p0  ;;  %s1276_s24 = scalar_lea.vmem %s1275_s9, 8192 }
  0x5a   : > { %v332_v24 = vld [vmem:[#allocation9 + $0xb8] sm:$0xff]  ;;  %v358_v25 = vld [vmem:[%s1524_s11 + $0x8] sm:$0xff]  ;;  %v345_v29 = vpack.c.bf16 %v318_v22, %v317_v21  ;;  %v315_v33 = vld [vmem:[#allocation9 + $0x30] sm:$0xff]  ;;  %p1277_p5 = scmp.lt.s32.totalorder %s1646_s19, %s1275_s9  ;;  %p1278_p7 = scmp.lt.s32.totalorder %s1276_s24, %s1270_s30 }
  0x5b   : > { %v360_v26 = vld [vmem:[%s1524_s11 + $0x18] sm:$0xff]  ;;  %v406_v27 = vld [vmem:[%s1532_s22 + $0x8] sm:$0xff]  ;;  %v352_v32 = vpack.c.bf16 %v332_v24, %v331_v23  ;;  %v329_v35 = vld [vmem:[#allocation9 + $0xa0] sm:$0xff]  ;;  %p1273_p8 = pneg %p1272_p4 }
  0x5c   : > { %979 = vmatpush3.bf16.msra.mxu0 %v347_v13  ;;  %1043 = vmatpush3.bf16.msra.mxu1 %v347_v13  ;;  %v408_v28 = vld [vmem:[%s1532_s22 + $0x18] sm:$0xff]  ;;  %v390_v30 = vpack.c.bf16 %v360_v26, %v358_v25  ;;  %v330_v36 = vld [vmem:[#allocation9 + $0xa8] sm:$0xff]  ;;  %v313_v39 = vld [vmem:[#allocation9 + $0x20] sm:$0xff]  ;;  %p1279_p2 = por %p1278_p7, %p1277_p5 }
  0x5d   : > { %980 = vmatprep.subr.bf16.mxu0 %v354_v14  ;;  %1044 = vmatprep.subr.bf16.mxu1 %v354_v14  ;;  %v438_v31 = vpack.c.bf16 %v408_v28, %v406_v27  ;;  %v316_v34 = vld [vmem:[#allocation9 + $0x38] sm:$0xff]  ;;  %v351_v38 = vpack.c.bf16 %v330_v36, %v329_v35  ;;  %v314_v40 = vld [vmem:[#allocation9 + $0x28] sm:$0xff]  ;;  %v327_v41 = vld [vmem:[#allocation9 + $0x90] sm:$0xff] }
  0x5e   : > { %501 = vmatprep.mubr.bf16.mxu0 %v390_v30  ;;  %v344_v37 = vpack.c.bf16 %v316_v34, %v315_v33  ;;  %v328_v42 = vld [vmem:[#allocation9 + $0x98] sm:$0xff]  ;;  %v343_v43 = vpack.c.bf16 %v314_v40, %v313_v39  ;;  %v311_v45 = vld [vmem:[#allocation9 + $0x10] sm:$0xff]  ;;  %v325_v47 = vld [vmem:[#allocation9 + $0x80] sm:$0xff]  ;;  %p1280_p6 = pnand %p1279_p2, %p1273_p8 }
  0x5f   : > { %646 = vmatprep.mubr.bf16.mxu1 %v438_v31  ;;  %v350_v44 = vpack.c.bf16 %v328_v42, %v327_v41  ;;  %v312_v46 = vld [vmem:[#allocation9 + $0x18] sm:$0xff]  ;;  %v326_v48 = vld [vmem:[#allocation9 + $0x88] sm:$0xff]  ;;  %v309_v51 = vld [vmem:[#allocation9] sm:$0xff] }
  0x60   : > { %981 = vmatpush3.bf16.msra.mxu0 %v346_v19  ;;  %1045 = vmatpush3.bf16.msra.mxu1 %v346_v19  ;;  %v342_v49 = vpack.c.bf16 %v312_v46, %v311_v45  ;;  %v349_v50 = vpack.c.bf16 %v326_v48, %v325_v47  ;;  %v310_v52 = vld [vmem:[#allocation9 + $0x8] sm:$0xff]  ;;  %v357_v53 = vld [vmem:[%s1524_s11] sm:$0xff]  ;;  %v359_v54 = vld [vmem:[%s1524_s11 + $0x10] sm:$0xff] }
  0x61   : > { %982 = vmatprep.subr.bf16.mxu0 %v353_v20  ;;  %1046 = vmatprep.subr.bf16.mxu1 %v353_v20  ;;  %v341_v55 = vpack.c.bf16 %v310_v52, %v309_v51  ;;  %v405_v56 = vld [vmem:[%s1532_s22] sm:$0xff]  ;;  %v407_v57 = vld [vmem:[%s1532_s22 + $0x10] sm:$0xff]  ;;  %v362_v58 = vld [vmem:[%s1524_s11 + $0x28] sm:$0xff]  ;;  %v389_v62 = vpack.c.bf16 %v359_v54, %v357_v53 }
  0x62   : > { %v364_v59 = vld [vmem:[%s1524_s11 + $0x38] sm:$0xff]  ;;  %v410_v60 = vld [vmem:[%s1532_s22 + $0x28] sm:$0xff]  ;;  %v437_v63 = vpack.c.bf16 %v407_v57, %v405_v56  ;;  %v361_v2 = vld [vmem:[%s1524_s11 + $0x20] sm:$0xff] }
  0x63   : > { %v412_v61 = vld [vmem:[%s1532_s22 + $0x38] sm:$0xff]  ;;  %v392_v0 = vpack.c.bf16 %v364_v59, %v362_v58  ;;  %v363_v3 = vld [vmem:[%s1524_s11 + $0x30] sm:$0xff]  ;;  %v409_v4 = vld [vmem:[%s1532_s22 + $0x20] sm:$0xff] }
  0x64   : > { %983 = vmatpush3.bf16.msra.mxu0 %v345_v29  ;;  %1047 = vmatpush3.bf16.msra.mxu1 %v345_v29  ;;  %v440_v1 = vpack.c.bf16 %v412_v61, %v410_v60  ;;  %v411_v5 = vld [vmem:[%s1532_s22 + $0x30] sm:$0xff]  ;;  %v366_v6 = vld [vmem:[%s1524_s11 + $0x48] sm:$0xff]  ;;  %v368_v7 = vld [vmem:[%s1524_s11 + $0x58] sm:$0xff]  ;;  %v391_v10 = vpack.c.bf16 %v363_v3, %v361_v2 }
  0x65   : > { %984 = vmatprep.subr.bf16.mxu0 %v352_v32  ;;  %1048 = vmatprep.subr.bf16.mxu1 %v352_v32  ;;  %v414_v8 = vld [vmem:[%s1532_s22 + $0x48] sm:$0xff]  ;;  %v416_v9 = vld [vmem:[%s1532_s22 + $0x58] sm:$0xff]  ;;  %v439_v11 = vpack.c.bf16 %v411_v5, %v409_v4  ;;  %v394_v12 = vpack.c.bf16 %v368_v7, %v366_v6  ;;  %v365_v14 = vld [vmem:[%s1524_s11 + $0x40] sm:$0xff] }
  0x66   : > { %v442_v13 = vpack.c.bf16 %v416_v9, %v414_v8  ;;  %v367_v15 = vld [vmem:[%s1524_s11 + $0x50] sm:$0xff]  ;;  %v413_v16 = vld [vmem:[%s1532_s22 + $0x40] sm:$0xff]  ;;  %v370_v18 = vld [vmem:[%s1524_s11 + $0x68] sm:$0xff] }
  0x67   : > { %v415_v17 = vld [vmem:[%s1532_s22 + $0x50] sm:$0xff]  ;;  %v372_v19 = vld [vmem:[%s1524_s11 + $0x78] sm:$0xff]  ;;  %v418_v20 = vld [vmem:[%s1532_s22 + $0x68] sm:$0xff]  ;;  %v393_v22 = vpack.c.bf16 %v367_v15, %v365_v14 }
  0x68   : > { %985 = vmatpush3.bf16.msra.mxu0 %v344_v37  ;;  %1049 = vmatpush3.bf16.msra.mxu1 %v344_v37  ;;  %v420_v21 = vld [vmem:[%s1532_s22 + $0x78] sm:$0xff]  ;;  %v441_v23 = vpack.c.bf16 %v415_v17, %v413_v16  ;;  %v396_v24 = vpack.c.bf16 %v372_v19, %v370_v18  ;;  %v369_v26 = vld [vmem:[%s1524_s11 + $0x60] sm:$0xff]  ;;  %v371_v27 = vld [vmem:[%s1524_s11 + $0x70] sm:$0xff] }
  0x69   : > { %986 = vmatprep.subr.bf16.mxu0 %v351_v38  ;;  %1050 = vmatprep.subr.bf16.mxu1 %v351_v38  ;;  %v444_v25 = vpack.c.bf16 %v420_v21, %v418_v20  ;;  %v417_v28 = vld [vmem:[%s1532_s22 + $0x60] sm:$0xff]  ;;  %v419_v29 = vld [vmem:[%s1532_s22 + $0x70] sm:$0xff]  ;;  %v374_v30 = vld [vmem:[%s1524_s11 + $0x88] sm:$0xff]  ;;  %v395_v34 = vpack.c.bf16 %v371_v27, %v369_v26 }
  0x6a   : > { %v376_v31 = vld [vmem:[%s1524_s11 + $0x98] sm:$0xff]  ;;  %v422_v32 = vld [vmem:[%s1532_s22 + $0x88] sm:$0xff]  ;;  %v443_v35 = vpack.c.bf16 %v419_v29, %v417_v28  ;;  %v373_v38 = vld [vmem:[%s1524_s11 + $0x80] sm:$0xff] }
  0x6b   : > { %v424_v33 = vld [vmem:[%s1532_s22 + $0x98] sm:$0xff]  ;;  %v398_v36 = vpack.c.bf16 %v376_v31, %v374_v30  ;;  %v375_v39 = vld [vmem:[%s1524_s11 + $0x90] sm:$0xff]  ;;  %v421_v40 = vld [vmem:[%s1532_s22 + $0x80] sm:$0xff] }
  0x6c   : > { %987 = vmatpush3.bf16.msra.mxu0 %v343_v43  ;;  %1051 = vmatpush3.bf16.msra.mxu1 %v343_v43  ;;  %v446_v37 = vpack.c.bf16 %v424_v33, %v422_v32  ;;  %v423_v41 = vld [vmem:[%s1532_s22 + $0x90] sm:$0xff]  ;;  %v378_v42 = vld [vmem:[%s1524_s11 + $0xa8] sm:$0xff]  ;;  %v380_v43 = vld [vmem:[%s1524_s11 + $0xb8] sm:$0xff]  ;;  %v397_v46 = vpack.c.bf16 %v375_v39, %v373_v38 }
  0x6d   : > { %988 = vmatprep.subr.bf16.mxu0 %v350_v44  ;;  %1052 = vmatprep.subr.bf16.mxu1 %v350_v44  ;;  %v426_v44 = vld [vmem:[%s1532_s22 + $0xa8] sm:$0xff]  ;;  %v428_v45 = vld [vmem:[%s1532_s22 + $0xb8] sm:$0xff]  ;;  %v445_v47 = vpack.c.bf16 %v423_v41, %v421_v40  ;;  %v400_v48 = vpack.c.bf16 %v380_v43, %v378_v42  ;;  %v379_v51 = vld [vmem:[%s1524_s11 + $0xb0] sm:$0xff] }
  0x6e   : > { %v425_v52 = vld [vmem:[%s1532_s22 + $0xa0] sm:$0xff]  ;;  %v427_v53 = vld [vmem:[%s1532_s22 + $0xb0] sm:$0xff]  ;;  %v382_v54 = vld [vmem:[%s1524_s11 + $0xc8] sm:$0xff] }
  0x6f   : > { %v430_v56 = vld [vmem:[%s1532_s22 + $0xc8] sm:$0xff]  ;;  %v432_v57 = vld [vmem:[%s1532_s22 + $0xd8] sm:$0xff]  ;;  %v447_v59 = vpack.c.bf16 %v427_v53, %v425_v52 }
  0x70   : > { %989 = vmatpush3.bf16.msra.mxu0 %v342_v49  ;;  %1053 = vmatpush3.bf16.msra.mxu1 %v342_v49  ;;  %v448_v49 = vpack.c.bf16 %v428_v45, %v426_v44  ;;  %v450_v61 = vpack.c.bf16 %v432_v57, %v430_v56  ;;  %v386_v2 = vld [vmem:[%s1524_s11 + $0xe8] sm:$0xff]  ;;  %v388_v3 = vld [vmem:[%s1524_s11 + $0xf8] sm:$0xff] }
  0x71   : > { %990 = vmatprep.subr.bf16.mxu0 %v349_v50  ;;  %1054 = vmatprep.subr.bf16.mxu1 %v349_v50  ;;  %v377_v50 = vld [vmem:[%s1524_s11 + $0xa0] sm:$0xff]  ;;  %v434_v4 = vld [vmem:[%s1532_s22 + $0xe8] sm:$0xff]  ;;  %v436_v5 = vld [vmem:[%s1532_s22 + $0xf8] sm:$0xff]  ;;  %v404_v8 = vpack.c.bf16 %v388_v3, %v386_v2 }
  0x72   : > { %v399_v58 = vpack.c.bf16 %v379_v51, %v377_v50  ;;  %v452_v9 = vpack.c.bf16 %v436_v5, %v434_v4 }
  0x74   : > { %991 = vmatpush3.bf16.msra.mxu0 %v341_v55  ;;  %1055 = vmatpush3.bf16.msra.mxu1 %v341_v55  ;;  %v384_v55 = vld [vmem:[%s1524_s11 + $0xd8] sm:$0xff] }
  0x75   : > { %v402_v60 = vpack.c.bf16 %v384_v55, %v382_v54 }
  0x77   : > { %502 = vmatmul.mubr.bf16.vlgmr.msra.gmra.mxu0 %v389_v62  ;;  %647 = vmatmul.mubr.bf16.vlgmr.msra.gmra.mxu1 %v437_v63  ;;  %v381_v62 = vld [vmem:[%s1524_s11 + $0xc0] sm:$0xff]  ;;  %v383_v63 = vld [vmem:[%s1524_s11 + $0xd0] sm:$0xff] }
  0x78   : > { %509 = vmatprep.mubr.bf16.mxu0 %v392_v0  ;;  %654 = vmatprep.mubr.bf16.mxu1 %v440_v1  ;;  %v429_v0 = vld [vmem:[%s1532_s22 + $0xc0] sm:$0xff]  ;;  %v431_v1 = vld [vmem:[%s1532_s22 + $0xd0] sm:$0xff]  ;;  %v401_v6 = vpack.c.bf16 %v383_v63, %v381_v62 }
  0x79   : > { %v449_v7 = vpack.c.bf16 %v431_v1, %v429_v0 }
  0x7f   : > { %510 = vmatmul.mubr.bf16.gmra.mxu0 %v391_v10  ;;  %655 = vmatmul.mubr.bf16.gmra.mxu1 %v439_v11  ;;  %v385_v10 = vld [vmem:[%s1524_s11 + $0xe0] sm:$0xff]  ;;  %v387_v11 = vld [vmem:[%s1524_s11 + $0xf0] sm:$0xff] }
  0x80   : > { %517 = vmatprep.mubr.bf16.mxu0 %v394_v12  ;;  %662 = vmatprep.mubr.bf16.mxu1 %v442_v13  ;;  %v433_v12 = vld [vmem:[%s1532_s22 + $0xe0] sm:$0xff]  ;;  %v435_v13 = vld [vmem:[%s1532_s22 + $0xf0] sm:$0xff]  ;;  %v403_v14 = vpack.c.bf16 %v387_v11, %v385_v10 }
  0x81   : > { %v451_v15 = vpack.c.bf16 %v435_v13, %v433_v12 }
  0x87   : > { %518 = vmatmul.mubr.bf16.gmra.mxu0 %v393_v22  ;;  %663 = vmatmul.mubr.bf16.gmra.mxu1 %v441_v23 }
  0x88   : > { %525 = vmatprep.mubr.bf16.mxu0 %v396_v24  ;;  %670 = vmatprep.mubr.bf16.mxu1 %v444_v25 }
  0x8f   : > { %526 = vmatmul.mubr.bf16.gmra.mxu0 %v395_v34  ;;  %671 = vmatmul.mubr.bf16.gmra.mxu1 %v443_v35 }
  0x90   : > { %533 = vmatprep.mubr.bf16.mxu0 %v398_v36  ;;  %678 = vmatprep.mubr.bf16.mxu1 %v446_v37 }
  0x97   : > { %534 = vmatmul.mubr.bf16.gmra.mxu0 %v397_v46  ;;  %679 = vmatmul.mubr.bf16.gmra.mxu1 %v445_v47 }
  0x98   : > { %541 = vmatprep.mubr.bf16.mxu0 %v400_v48  ;;  %686 = vmatprep.mubr.bf16.mxu1 %v448_v49 }
  0x9f   : > { %542 = vmatmul.mubr.bf16.gmra.mxu0 %v399_v58  ;;  %687 = vmatmul.mubr.bf16.gmra.mxu1 %v447_v59 }
  0xa0   : > { %549 = vmatprep.mubr.bf16.mxu0 %v402_v60  ;;  %694 = vmatprep.mubr.bf16.mxu1 %v450_v61 }
  0xa7   : > { %550 = vmatmul.mubr.bf16.gmra.mxu0 %v401_v6  ;;  %695 = vmatmul.mubr.bf16.gmra.mxu1 %v449_v7 }
  0xa8   : > { %557 = vmatprep.mubr.bf16.mxu0 %v404_v8  ;;  %702 = vmatprep.mubr.bf16.mxu1 %v452_v9 }
  0xaf   : > { %558 = vmatmul.mubr.bf16.gmra.mxu0 %v403_v14  ;;  %703 = vmatmul.mubr.bf16.gmra.mxu1 %v451_v15 }
 0x137   : > { %v992_v16 = vpop.f32.mrf.mxu0  ;;  %v1056_v17 = vpop.f32.mrf.mxu1 }
 0x139   : > { %v993_v18 = vpop.f32.mrf.mxu0  ;;  %v1057_v19 = vpop.f32.mrf.mxu1 }
 0x13a   : > { %v994_v20 = vadd.f32 %v993_v18, %v992_v16  ;;  %v1058_v21 = vadd.f32 %v1057_v19, %v1056_v17 }
 0x13b   : > { %v995_v22 = vpop.f32.mrf.mxu0  ;;  %v1059_v23 = vpop.f32.mrf.mxu1 }
 0x13c   : > { %762 = vst [vmem:[%s1607_s18] sm:$0xff] %v994_v20  ;;  %794 = vst [vmem:[%s1607_s18 + $0x8] sm:$0xff] %v1058_v21 }
 0x13d   : > { %v996_v24 = vpop.f32.mrf.mxu0  ;;  %v1060_v25 = vpop.f32.mrf.mxu1 }
 0x13e   : > { %v997_v26 = vadd.f32 %v996_v24, %v995_v22  ;;  %v1061_v27 = vadd.f32 %v1060_v25, %v1059_v23 }
 0x13f   : > { %v998_v28 = vpop.f32.mrf.mxu0  ;;  %v1062_v29 = vpop.f32.mrf.mxu1 }
 0x140   : > { %763 = vst [vmem:[%s1607_s18 + $0x10] sm:$0xff] %v997_v26  ;;  %795 = vst [vmem:[%s1607_s18 + $0x18] sm:$0xff] %v1061_v27 }
 0x141   : > { %v999_v30 = vpop.f32.mrf.mxu0  ;;  %v1063_v31 = vpop.f32.mrf.mxu1 }
 0x142   : > { %v1000_v32 = vadd.f32 %v999_v30, %v998_v28  ;;  %v1064_v33 = vadd.f32 %v1063_v31, %v1062_v29 }
 0x143   : > { %v1001_v34 = vpop.f32.mrf.mxu0  ;;  %v1065_v35 = vpop.f32.mrf.mxu1 }
 0x144   : > { %764 = vst [vmem:[%s1607_s18 + $0x20] sm:$0xff] %v1000_v32  ;;  %796 = vst [vmem:[%s1607_s18 + $0x28] sm:$0xff] %v1064_v33 }
 0x145   : > { %v1002_v36 = vpop.f32.mrf.mxu0  ;;  %v1066_v37 = vpop.f32.mrf.mxu1 }
 0x146   : > { %v1003_v38 = vadd.f32 %v1002_v36, %v1001_v34  ;;  %v1067_v39 = vadd.f32 %v1066_v37, %v1065_v35 }
 0x147   : > { %v1004_v40 = vpop.f32.mrf.mxu0  ;;  %v1068_v41 = vpop.f32.mrf.mxu1 }
 0x148   : > { %765 = vst [vmem:[%s1607_s18 + $0x30] sm:$0xff] %v1003_v38  ;;  %797 = vst [vmem:[%s1607_s18 + $0x38] sm:$0xff] %v1067_v39 }
 0x149   : > { %v1005_v42 = vpop.f32.mrf.mxu0  ;;  %v1069_v43 = vpop.f32.mrf.mxu1 }
 0x14a   : > { %v1006_v44 = vadd.f32 %v1005_v42, %v1004_v40  ;;  %v1070_v45 = vadd.f32 %v1069_v43, %v1068_v41 }
 0x14b   : > { %v1007_v46 = vpop.f32.mrf.mxu0  ;;  %v1071_v47 = vpop.f32.mrf.mxu1 }
 0x14c   : > { %766 = vst [vmem:[%s1607_s18 + $0x40] sm:$0xff] %v1006_v44  ;;  %798 = vst [vmem:[%s1607_s18 + $0x48] sm:$0xff] %v1070_v45 }
 0x14d   : > { %v1008_v48 = vpop.f32.mrf.mxu0  ;;  %v1072_v49 = vpop.f32.mrf.mxu1 }
 0x14e   : > { %v1009_v50 = vadd.f32 %v1008_v48, %v1007_v46  ;;  %v1073_v51 = vadd.f32 %v1072_v49, %v1071_v47 }
 0x14f   : > { %v1010_v52 = vpop.f32.mrf.mxu0  ;;  %v1074_v53 = vpop.f32.mrf.mxu1 }
 0x150   : > { %767 = vst [vmem:[%s1607_s18 + $0x50] sm:$0xff] %v1009_v50  ;;  %799 = vst [vmem:[%s1607_s18 + $0x58] sm:$0xff] %v1073_v51 }
 0x151   : > { %v1011_v54 = vpop.f32.mrf.mxu0  ;;  %v1075_v55 = vpop.f32.mrf.mxu1 }
 0x152   : > { %v1012_v56 = vadd.f32 %v1011_v54, %v1010_v52  ;;  %v1076_v57 = vadd.f32 %v1075_v55, %v1074_v53 }
 0x153   : > { %v1013_v58 = vpop.f32.mrf.mxu0  ;;  %v1077_v59 = vpop.f32.mrf.mxu1 }
 0x154   : > { %768 = vst [vmem:[%s1607_s18 + $0x60] sm:$0xff] %v1012_v56  ;;  %800 = vst [vmem:[%s1607_s18 + $0x68] sm:$0xff] %v1076_v57 }
 0x155   : > { %v1014_v60 = vpop.f32.mrf.mxu0  ;;  %v1078_v61 = vpop.f32.mrf.mxu1 }
 0x156   : > { %v1015_v62 = vadd.f32 %v1014_v60, %v1013_v58  ;;  %v1079_v63 = vadd.f32 %v1078_v61, %v1077_v59 }
 0x157   : > { %v1016_v0 = vpop.f32.mrf.mxu0  ;;  %v1080_v1 = vpop.f32.mrf.mxu1 }
 0x158   : > { %769 = vst [vmem:[%s1607_s18 + $0x70] sm:$0xff] %v1015_v62  ;;  %801 = vst [vmem:[%s1607_s18 + $0x78] sm:$0xff] %v1079_v63 }
 0x159   : > { %v1017_v2 = vpop.f32.mrf.mxu0  ;;  %v1081_v3 = vpop.f32.mrf.mxu1 }
 0x15a   : > { %v1018_v4 = vadd.f32 %v1017_v2, %v1016_v0  ;;  %v1082_v5 = vadd.f32 %v1081_v3, %v1080_v1 }
 0x15b   : > { %v1019_v6 = vpop.f32.mrf.mxu0  ;;  %v1083_v7 = vpop.f32.mrf.mxu1 }
 0x15c   : > { %770 = vst [vmem:[%s1607_s18 + $0x80] sm:$0xff] %v1018_v4  ;;  %802 = vst [vmem:[%s1607_s18 + $0x88] sm:$0xff] %v1082_v5 }
 0x15d   : > { %v1020_v8 = vpop.f32.mrf.mxu0  ;;  %v1084_v9 = vpop.f32.mrf.mxu1 }
 0x15e   : > { %v1021_v10 = vadd.f32 %v1020_v8, %v1019_v6  ;;  %v1085_v11 = vadd.f32 %v1084_v9, %v1083_v7 }
 0x15f   : > { %v1022_v12 = vpop.f32.mrf.mxu0  ;;  %v1086_v13 = vpop.f32.mrf.mxu1 }
 0x160   : > { %771 = vst [vmem:[%s1607_s18 + $0x90] sm:$0xff] %v1021_v10  ;;  %803 = vst [vmem:[%s1607_s18 + $0x98] sm:$0xff] %v1085_v11 }
 0x161   : > { %v1023_v14 = vpop.f32.mrf.mxu0  ;;  %v1087_v15 = vpop.f32.mrf.mxu1 }
 0x162   : > { %v1024_v16 = vadd.f32 %v1023_v14, %v1022_v12  ;;  %v1088_v17 = vadd.f32 %v1087_v15, %v1086_v13 }
 0x163   : > { %v1025_v18 = vpop.f32.mrf.mxu0  ;;  %v1089_v19 = vpop.f32.mrf.mxu1 }
 0x164   : > { %772 = vst [vmem:[%s1607_s18 + $0xa0] sm:$0xff] %v1024_v16  ;;  %804 = vst [vmem:[%s1607_s18 + $0xa8] sm:$0xff] %v1088_v17 }
 0x165   : > { %v1026_v20 = vpop.f32.mrf.mxu0  ;;  %v1090_v21 = vpop.f32.mrf.mxu1 }
 0x166   : > { %v1027_v22 = vadd.f32 %v1026_v20, %v1025_v18  ;;  %v1091_v23 = vadd.f32 %v1090_v21, %v1089_v19 }
 0x167   : > { %v1028_v24 = vpop.f32.mrf.mxu0  ;;  %v1092_v25 = vpop.f32.mrf.mxu1 }
 0x168   : > { %773 = vst [vmem:[%s1607_s18 + $0xb0] sm:$0xff] %v1027_v22  ;;  %805 = vst [vmem:[%s1607_s18 + $0xb8] sm:$0xff] %v1091_v23 }
 0x169   : > { %v1029_v26 = vpop.f32.mrf.mxu0  ;;  %v1093_v27 = vpop.f32.mrf.mxu1 }
 0x16a   : > { %v1030_v28 = vadd.f32 %v1029_v26, %v1028_v24  ;;  %v1094_v29 = vadd.f32 %v1093_v27, %v1092_v25 }
 0x16b   : > { %v1031_v30 = vpop.f32.mrf.mxu0  ;;  %v1095_v31 = vpop.f32.mrf.mxu1 }
 0x16c   : > { %774 = vst [vmem:[%s1607_s18 + $0xc0] sm:$0xff] %v1030_v28  ;;  %806 = vst [vmem:[%s1607_s18 + $0xc8] sm:$0xff] %v1094_v29 }
 0x16d   : > { %v1032_v32 = vpop.f32.mrf.mxu0  ;;  %v1096_v33 = vpop.f32.mrf.mxu1 }
 0x16e   : > { %v1033_v34 = vadd.f32 %v1032_v32, %v1031_v30  ;;  %v1097_v35 = vadd.f32 %v1096_v33, %v1095_v31 }
 0x16f   : > { %v1034_v36 = vpop.f32.mrf.mxu0  ;;  %v1098_v37 = vpop.f32.mrf.mxu1 }
 0x170   : > { %775 = vst [vmem:[%s1607_s18 + $0xd0] sm:$0xff] %v1033_v34  ;;  %807 = vst [vmem:[%s1607_s18 + $0xd8] sm:$0xff] %v1097_v35 }
 0x171   : > { %v1035_v38 = vpop.f32.mrf.mxu0  ;;  %v1099_v39 = vpop.f32.mrf.mxu1 }
 0x172   : > { %v1036_v40 = vadd.f32 %v1035_v38, %v1034_v36  ;;  %v1100_v41 = vadd.f32 %v1099_v39, %v1098_v37 }
 0x173   : > { %v1037_v42 = vpop.f32.mrf.mxu0  ;;  %v1101_v43 = vpop.f32.mrf.mxu1 }
 0x174   : > { %776 = vst [vmem:[%s1607_s18 + $0xe0] sm:$0xff] %v1036_v40  ;;  %808 = vst [vmem:[%s1607_s18 + $0xe8] sm:$0xff] %v1100_v41 }
 0x175   : > { %v1038_v44 = vpop.f32.mrf.mxu0  ;;  %v1102_v45 = vpop.f32.mrf.mxu1 }
 0x176   : > { %v1039_v46 = vadd.f32 %v1038_v44, %v1037_v42  ;;  %v1103_v47 = vadd.f32 %v1102_v45, %v1101_v43 }
 0x178   : > { %777 = vst [vmem:[%s1607_s18 + $0xf0] sm:$0xff] %v1039_v46  ;;  %809 = vst [vmem:[%s1607_s18 + $0xf8] sm:$0xff] %v1103_v47 }
 0x179   : > { %1283 = shalt.err (!%p1280_p6)
}
 0x17a   : > { %s1284_s27 = scalar_lea.hbm %s1644_s29, 4096  ;;  %s1288_s4 = scalar_lea.hbm %s1699_s3, 8192 }
 0x17b   : > { %p1285_p9 = scmp.ne.s32.totalorder %s1644_s29, %s1284_s27  ;;  %p1289_p3 = scmp.lt.s32.totalorder %s1644_s29, %s1699_s3 }
 0x17c   : > { %p1290_p11 = scmp.lt.s32.totalorder %s1288_s4, %s1284_s27 }
 0x17d   : > { %p1286_p13 = pnand %p1285_p9, %p1473_p0 }
 0x17e   : > { %p1291_p1 = por %p1290_p11, %p1289_p3 }
 0x17f   : > { %p1287_p12 = pneg %p1286_p13 }
 0x181   : > { %p1292_p4 = pnand %p1291_p1, %p1287_p12 }
 0x183   : > { %1295 = shalt.err (!%p1292_p4)
}
 0x184   : > { %s1368_s16 = smov 256   ;;  %s1369_s11 = smov 16  }
 0x185   : > { %1112 = dma.vmem_to_hbm [thread:$0]  (%p1473_p0), %s1646_s19, 4096, %s1644_s29, %s811_s15, %s1368_s16, %s1368_s16, %s1369_s11  }
 0x186 PF: > { %s840_s0 = sand.u32 1, %s1338_s12   ;;  %p1717_p8 = scmp.ne.s32.totalorder %s1706_s21, 0 }
 0x187   : > { %s841_s2 = scalar_lea.sflag [#allocation6], %s840_s0 }
 0x188   : > { %p1126_p5 = pnand %p950_p10, %p1717_p8 }
 0x18a   : > { %p1127_p7 = pneg %p1126_p5 }
 0x18c   : > { %1333 = dma.done.wait (%p1127_p7), %s841_s2, 4096  }
 0x18d   : > { %1335 = vsyncadd (%p1127_p7), %s841_s2, 4294963200  ;;  %s22_s17 = sadd.s32 1, %s1358_s17   ;;  %s1718_s7 = sld [smem:[#allocation17_spill]] }
 0x18e   : > { %p19_p2 = scmp.ge.s32.totalorder %s22_s17, 4   ;;  %s1719_s15 = sld [smem:[#allocation15_spill]] }
 0x18f   : > { %s1720_s16 = sld [smem:[#allocation16_spill]]  ;;  %s1721_s12 = smov %s1342_s13 }
 0x190   : > { %s1722_s13 = smov %s1346_s14  ;;  %21 = sbr.rel (!%p19_p2) target bundleno = 11 (0xb), region = 103 }
 0x193   : > { %s1723_s14 = smov %s1718_s7 }
 0x195   :  { %846 = vsyncpa [#allocation5], 1 }
 0x196   :  { %848 = vsyncpa [#allocation5 + $0x1], 1 }
 0x197   :  { %849 = vsyncpa [#allocation8], 1 }
 0x198   :  { %851 = vsyncpa [#allocation8 + $0x1], 1 }
 0x199   :  { %852 = vsyncpa [#allocation6], 1 }
 0x19a   :  { %854 = vsyncpa [#allocation6 + $0x1], 1 }

</bundles_post_ra>
